<compile_context>
chip_gen: v7x
topology: tpu7x:2x2x1
jax: 0.10.0
libtpu: 0.0.40
codegen_flags: <defaults>
</compile_context>

<pallas_src>
import jax
import jax.numpy as jnp
from jax.experimental import pallas as pl
from jax.experimental.pallas import tpu as pltpu

_LANE = 128
_BN_EPS = 1e-5


# --------------------------------------------------------------------------- #
# Kernel
# --------------------------------------------------------------------------- #
def _mlp_kernel(x_ref, w1_ref, b1_ref, w2_ref, b2_ref, w3_ref, b3_ref, o_ref):
    # x arrives in its storage dtype (f32); cast to the compute dtype here —
    # the VPU cast is hidden under the MXU and avoids a host-side cast pass.
    x = x_ref[...].astype(w1_ref.dtype)

    # Layer 1 (BatchNorm folded into w1/b1): Linear -> ReLU.
    h = jnp.dot(x, w1_ref[...], preferred_element_type=jnp.float32)
    h = jnp.maximum(h + b1_ref[...], 0.0)
    # TODO(synk): Dropout(0.5) in training mode would need pltpu.prng_random_bits
    #             masking; eval-mode forward is identity, which is what we emit.

    # Layer 2: Linear -> ReLU -> Dropout(identity in eval).
    h = jnp.dot(h.astype(w2_ref.dtype), w2_ref[...],
                preferred_element_type=jnp.float32)
    h = jnp.maximum(h + b2_ref[...], 0.0)

    # Output layer: Linear.
    out = jnp.dot(h.astype(w3_ref.dtype), w3_ref[...],
                  preferred_element_type=jnp.float32)
    o_ref[...] = (out + b3_ref[...]).astype(o_ref.dtype)


# --------------------------------------------------------------------------- #
# Helpers
# --------------------------------------------------------------------------- #
def _round_up(n, m):
    return ((n + m - 1) // m) * m


def _pad_to(a, shape):
    pads = [(0, t - s) for s, t in zip(a.shape, shape)]
    if all(p == (0, 0) for p in pads):
        return a
    return jnp.pad(a, pads)


def _device_kind():
    try:
        return jax.devices()[0].device_kind.lower()
    except Exception:
        return ""


def _is_wide_mxu(kind):
    # v6e / v7x: 2x256x256 MXU; v5e (and older): 128-wide.
    return ("v6" in kind) or ("v7" in kind)


def _vmem_limit_bytes():
    # Cap scoped VMEM below physical capacity, leaving headroom for Mosaic's
    # internal scratch:  v7x 64 MiB/TC -> ~52 MiB;  v5e/v6e 128 MiB -> 100 MiB.
    try:
        cap = pltpu.get_tpu_info().vmem_capacity_bytes
    except Exception:
        cap = 128 * 1024 * 1024
    return min(int(cap * 0.82), 100 * 1024 * 1024)


# --------------------------------------------------------------------------- #
# One-time parameter preparation (cache the result; reuse across forwards)
# --------------------------------------------------------------------------- #
def prepare_params(params, *, compute_dtype=jnp.bfloat16):
    """Fold BatchNorm into Linear #1, zero-pad feature dims to MXU/lane
    friendly multiples and cast weights to the compute dtype.  Call once per
    model; the per-forward path then touches no weight bytes on the host."""
    kind = _device_kind()
    wide = _is_wide_mxu(kind)

    d_in, h1 = params["w1"].shape
    h2 = params["w2"].shape[1]
    d_out = params["w3"].shape[1]

    def align(dim):
        # 256-align large dims to fill the 2x256x256 MXU on v6e/v7x; otherwise
        # 128 (v5e's 128-wide MXU, or small dims where extra padding is waste).
        return _round_up(dim, 256 if (wide and dim >= 256) else _LANE)

    d_in_p, h1_p = align(d_in), align(h1)
    h2_p, d_out_p = align(h2), align(d_out)

    # Fold BatchNorm1d (eval-mode running stats + affine) into Linear #1.
    scale = params["bn_gamma"] * jax.lax.rsqrt(params["bn_var"] + _BN_EPS)  # (1, d_in)
    shift = params["bn_beta"] - params["bn_mean"] * scale                    # (1, d_in)
    w1 = params["w1"] * scale.T                                              # (d_in, h1)
    b1 = params["b1"] + shift @ params["w1"]                                 # (1, h1)

    return {
        "w1": _pad_to(w1, (d_in_p, h1_p)).astype(compute_dtype),
        "b1": _pad_to(b1, (1, h1_p)).astype(jnp.float32),
        "w2": _pad_to(params["w2"], (h1_p, h2_p)).astype(compute_dtype),
        "b2": _pad_to(params["b2"], (1, h2_p)).astype(jnp.float32),
        "w3": _pad_to(params["w3"], (h2_p, d_out_p)).astype(compute_dtype),
        "b3": _pad_to(params["b3"], (1, d_out_p)).astype(jnp.float32),
        "d_in": d_in,
        "d_out": d_out,
        "compute_dtype": compute_dtype,
    }


# --------------------------------------------------------------------------- #
# Forward
# --------------------------------------------------------------------------- #
def custom_mlp_forward(x, prepped, *, batch_tile=None, out_dtype=None):
    """Fused CustomMLP forward pass (eval mode).

    x:       [batch, input_dim] float32
    prepped: output of prepare_params() (padded / folded / cast weights).
    """
    batch, d_in = x.shape
    assert d_in == prepped["d_in"], "input_dim mismatch with prepared params"
    compute_dtype = prepped["compute_dtype"]
    out_dtype = x.dtype if out_dtype is None else out_dtype  # bf16 halves writeback

    d_in_p, h1_p = prepped["w1"].shape
    h2_p, d_out_p = prepped["w3"].shape
    d_out = prepped["d_out"]

    # Sublane-packing minimum for the batch tile: (8,128) f32, (16,128) bf16.
    sublane_min = 8 * (4 // jnp.dtype(compute_dtype).itemsize)
    kind = _device_kind()
    if batch_tile is None:
        preferred = 256 if _is_wide_mxu(kind) else 128   # fill MXU M on v6e/v7x
        batch_tile = min(preferred, _round_up(batch, sublane_min))
        if "v7" in kind and batch > sublane_min:
            # 2 TensorCores/chip: keep >= 2 parallel grid steps when possible.
            batch_tile = min(batch_tile, _round_up(pl.cdiv(batch, 2), sublane_min))
    assert batch_tile % sublane_min == 0, (
        f"batch_tile must be a multiple of {sublane_min} for "
        f"{jnp.dtype(compute_dtype).name}")

    batch_p = _round_up(batch, batch_tile)
    # x stays f32 in HBM; padded only when misaligned; cast happens in-kernel.
    x_p = _pad_to(x, (batch_p, d_in_p))

    # VMEM budget: weights single-buffered + double-buffered x / out tiles.
    vmem_limit = _vmem_limit_bytes()
    w_item = jnp.dtype(compute_dtype).itemsize
    weight_bytes = w_item * (d_in_p * h1_p + h1_p * h2_p + h2_p * d_out_p)
    act_bytes = 2 * batch_tile * (d_in_p * x_p.dtype.itemsize
                                  + d_out_p * jnp.dtype(out_dtype).itemsize)
    if weight_bytes + act_bytes > vmem_limit:
        # TODO(synk): for very large hidden dims, tile the per-layer K/N dims
        # with a reduction grid axis (or an inner pltpu.emit_pipeline) instead
        # of keeping all three weight matrices co-resident in VMEM.
        raise ValueError(
            f"fused CustomMLP kernel needs ~{(weight_bytes + act_bytes) >> 20} MiB "
            f"VMEM but the budget is {vmem_limit >> 20} MiB; reduce hidden dims "
            f"or batch_tile, or add a K/N-tiled path.")

    grid = (batch_p // batch_tile,)

    # Constant index_map + single buffering: the weight/bias blocks are fetched
    # once and stay resident; no pointless 2x buffer allocation.
    resident = pl.Buffered(1)

    def rowvec_spec(n):
        return pl.BlockSpec((1, n), lambda i: (0, 0), pipeline_mode=resident)

    def mat_spec(m, n):
        return pl.BlockSpec((m, n), lambda i: (0, 0), pipeline_mode=resident)

    out_p = pl.pallas_call(
        _mlp_kernel,
        out_shape=jax.ShapeDtypeStruct((batch_p, d_out_p), out_dtype),
        grid_spec=pltpu.PrefetchScalarGridSpec(
            num_scalar_prefetch=0,
            grid=grid,
            in_specs=[
                pl.BlockSpec((batch_tile, d_in_p), lambda i: (i, 0)),  # x tile
                mat_spec(d_in_p, h1_p), rowvec_spec(h1_p),             # w1, b1
                mat_spec(h1_p, h2_p), rowvec_spec(h2_p),               # w2, b2
                mat_spec(h2_p, d_out_p), rowvec_spec(d_out_p),         # w3, b3
            ],
            out_specs=pl.BlockSpec((batch_tile, d_out_p), lambda i: (i, 0)),
        ),
        compiler_params=pltpu.CompilerParams(
            dimension_semantics=("parallel",),
            vmem_limit_bytes=vmem_limit,
        ),
    )(x_p, prepped["w1"], prepped["b1"], prepped["w2"], prepped["b2"],
      prepped["w3"], prepped["b3"])

    # Padded batch rows / padded output lanes are garbage/zero — slice off.
    return out_p[:batch, :d_out]


# --------------------------------------------------------------------------- #
# Reference + test harness
# --------------------------------------------------------------------------- #
def _reference_forward(x, p):
    inv_std = jax.lax.rsqrt(p["bn_var"] + _BN_EPS)
    h = (x - p["bn_mean"]) * inv_std * p["bn_gamma"] + p["bn_beta"]
    h = jnp.maximum(h @ p["w1"] + p["b1"], 0.0)
    h = jnp.maximum(h @ p["w2"] + p["b2"], 0.0)
    return h @ p["w3"] + p["b3"]


def _init_params(key, input_dim, hidden_dims, output_dim):
    assert len(hidden_dims) == 2, "fused kernel is built for two hidden layers"
    h1, h2 = hidden_dims
    keys = jax.random.split(key, 8)

    def linear_init(kw, kb, fan_in, fan_out):
        bound = 1.0 / jnp.sqrt(fan_in)
        w = jax.random.uniform(kw, (fan_in, fan_out), jnp.float32, -bound, bound)
        b = jax.random.uniform(kb, (1, fan_out), jnp.float32, -bound, bound)
        return w, b

    w1, b1 = linear_init(keys[0], keys[1], input_dim, h1)
    w2, b2 = linear_init(keys[2], keys[3], h1, h2)
    w3, b3 = linear_init(keys[4], keys[5], h2, output_dim)
    return {
        "bn_gamma": jnp.ones((1, input_dim), jnp.float32),
        "bn_beta": jnp.zeros((1, input_dim), jnp.float32),
        # deterministic non-trivial running stats
        "bn_mean": 0.1 * jax.random.normal(keys[6], (1, input_dim), jnp.float32),
        "bn_var": 1.0 + 0.1 * jax.random.uniform(keys[7], (1, input_dim), jnp.float32),
        "w1": w1, "b1": b1,
        "w2": w2, "b2": b2,
        "w3": w3, "b3": b3,
    }


if __name__ == "__main__":
    key = jax.random.PRNGKey(0)
    kx, kp = jax.random.split(key)

    batch, input_dim, hidden_dims, output_dim = 16, 16, [32, 32], 8
    x = jax.random.normal(kx, (batch, input_dim), jnp.float32)
    params = _init_params(kp, input_dim, hidden_dims, output_dim)

    ref = _reference_forward(x, params)

    # bf16 path (v6e/v7x-preferred): one-time param prep, f32 MXU accumulation.
    prepped_bf16 = prepare_params(params, compute_dtype=jnp.bfloat16)
    out_bf16 = jax.block_until_ready(custom_mlp_forward(x, prepped_bf16))
    assert out_bf16.shape == (batch, output_dim)
    assert jnp.allclose(out_bf16, ref, atol=2e-2, rtol=2e-2), "bf16 mismatch"

    # f32 path: tight tolerance sanity check of the fused/padded kernel.
    prepped_f32 = prepare_params(params, compute_dtype=jnp.float32)
    out_f32 = jax.block_until_ready(custom_mlp_forward(x, prepped_f32))
    assert out_f32.shape == (batch, output_dim)
    assert jnp.allclose(out_f32, ref, atol=1e-4, rtol=1e-4), "f32 mismatch"

    print("KERNEL_OK")
</pallas_src>

<mosaic_0001>
module attributes {stable_mosaic.version = 11 : i64} {
  func.func @_mlp_kernel(%arg0: i32, %arg1: memref<16x128xf32, #tpu.memory_space<vmem>>, %arg2: memref<128x128xbf16, #tpu.memory_space<vmem>>, %arg3: memref<1x128xf32, #tpu.memory_space<vmem>>, %arg4: memref<128x128xbf16, #tpu.memory_space<vmem>>, %arg5: memref<1x128xf32, #tpu.memory_space<vmem>>, %arg6: memref<128x128xbf16, #tpu.memory_space<vmem>>, %arg7: memref<1x128xf32, #tpu.memory_space<vmem>>, %arg8: memref<16x128xf32, #tpu.memory_space<vmem>>) attributes {dimension_semantics = [#tpu.dimension_semantics<parallel>], iteration_bounds = array<i64: 1>, scalar_prefetch = 0 : i64, scratch_operands = 0 : i64, tpu.core_type = #tpu.core_type<tc>, window_params = [{transform_indices = @transform_0, window_bounds = array<i64: 16, 128>}, {pipeline_mode = #tpu.pipeline_mode<synchronous>, transform_indices = @transform_1, window_bounds = array<i64: 128, 128>}, {pipeline_mode = #tpu.pipeline_mode<synchronous>, transform_indices = @transform_2, window_bounds = array<i64: 1, 128>}, {pipeline_mode = #tpu.pipeline_mode<synchronous>, transform_indices = @transform_3, window_bounds = array<i64: 128, 128>}, {pipeline_mode = #tpu.pipeline_mode<synchronous>, transform_indices = @transform_4, window_bounds = array<i64: 1, 128>}, {pipeline_mode = #tpu.pipeline_mode<synchronous>, transform_indices = @transform_5, window_bounds = array<i64: 128, 128>}, {pipeline_mode = #tpu.pipeline_mode<synchronous>, transform_indices = @transform_6, window_bounds = array<i64: 1, 128>}, {transform_indices = @transform_7, window_bounds = array<i64: 16, 128>}]} {
    %c0 = arith.constant 0 : index
    %c0_0 = arith.constant 0 : index
    %0 = vector.load %arg1[%c0, %c0_0] : memref<16x128xf32, #tpu.memory_space<vmem>>, vector<16x128xf32>
    %1 = arith.truncf %0 : vector<16x128xf32> to vector<16x128xbf16>
    %c0_1 = arith.constant 0 : index
    %c0_2 = arith.constant 0 : index
    %2 = vector.load %arg2[%c0_1, %c0_2] : memref<128x128xbf16, #tpu.memory_space<vmem>>, vector<128x128xbf16>
    %cst = arith.constant dense<0.000000e+00> : vector<16x128xf32>
    %3 = tpu.matmul %1, %2, %cst {dimension_numbers = #tpu.dot_dimension_numbers<[1], [0], [0], [1], [0, 0, 1, 1], [], []>} : vector<16x128xbf16>, vector<128x128xbf16>, vector<16x128xf32> -> vector<16x128xf32>
    %c0_3 = arith.constant 0 : index
    %c0_4 = arith.constant 0 : index
    %4 = vector.load %arg3[%c0_3, %c0_4] : memref<1x128xf32, #tpu.memory_space<vmem>>, vector<1x128xf32>
    %5 = vector.broadcast %4 : vector<1x128xf32> to vector<16x128xf32>
    %6 = arith.addf %3, %5 : vector<16x128xf32>
    %cst_5 = arith.constant 0.000000e+00 : f32
    %7 = vector.broadcast %cst_5 : f32 to vector<16x128xf32>
    %8 = arith.maximumf %6, %7 : vector<16x128xf32>
    %9 = arith.truncf %8 : vector<16x128xf32> to vector<16x128xbf16>
    %c0_6 = arith.constant 0 : index
    %c0_7 = arith.constant 0 : index
    %10 = vector.load %arg4[%c0_6, %c0_7] : memref<128x128xbf16, #tpu.memory_space<vmem>>, vector<128x128xbf16>
    %cst_8 = arith.constant dense<0.000000e+00> : vector<16x128xf32>
    %11 = tpu.matmul %9, %10, %cst_8 {dimension_numbers = #tpu.dot_dimension_numbers<[1], [0], [0], [1], [0, 0, 1, 1], [], []>} : vector<16x128xbf16>, vector<128x128xbf16>, vector<16x128xf32> -> vector<16x128xf32>
    %c0_9 = arith.constant 0 : index
    %c0_10 = arith.constant 0 : index
    %12 = vector.load %arg5[%c0_9, %c0_10] : memref<1x128xf32, #tpu.memory_space<vmem>>, vector<1x128xf32>
    %13 = vector.broadcast %12 : vector<1x128xf32> to vector<16x128xf32>
    %14 = arith.addf %11, %13 : vector<16x128xf32>
    %cst_11 = arith.constant 0.000000e+00 : f32
    %15 = vector.broadcast %cst_11 : f32 to vector<16x128xf32>
    %16 = arith.maximumf %14, %15 : vector<16x128xf32>
    %17 = arith.truncf %16 : vector<16x128xf32> to vector<16x128xbf16>
    %c0_12 = arith.constant 0 : index
    %c0_13 = arith.constant 0 : index
    %18 = vector.load %arg6[%c0_12, %c0_13] : memref<128x128xbf16, #tpu.memory_space<vmem>>, vector<128x128xbf16>
    %cst_14 = arith.constant dense<0.000000e+00> : vector<16x128xf32>
    %19 = tpu.matmul %17, %18, %cst_14 {dimension_numbers = #tpu.dot_dimension_numbers<[1], [0], [0], [1], [0, 0, 1, 1], [], []>} : vector<16x128xbf16>, vector<128x128xbf16>, vector<16x128xf32> -> vector<16x128xf32>
    %c0_15 = arith.constant 0 : index
    %c0_16 = arith.constant 0 : index
    %20 = vector.load %arg7[%c0_15, %c0_16] : memref<1x128xf32, #tpu.memory_space<vmem>>, vector<1x128xf32>
    %21 = vector.broadcast %20 : vector<1x128xf32> to vector<16x128xf32>
    %22 = arith.addf %19, %21 : vector<16x128xf32>
    %c0_17 = arith.constant 0 : index
    %c0_18 = arith.constant 0 : index
    %23 = vector.load %arg8[%c0_17, %c0_18] : memref<16x128xf32, #tpu.memory_space<vmem>>, vector<16x128xf32>
    tpu.vector_store %arg8[%c0_17, %c0_18], %22 {strides = array<i32>} : memref<16x128xf32, #tpu.memory_space<vmem>>, vector<16x128xf32>,
    return
  }
  func.func @transform_0(%arg0: i32) -> (i32, i32) {
    %c0_i32 = arith.constant 0 : i32
    %c0_i32_0 = arith.constant 0 : i32
    return %arg0, %c0_i32 : i32, i32
  }
  func.func @transform_1(%arg0: i32) -> (i32, i32) {
    %c0_i32 = arith.constant 0 : i32
    %c0_i32_0 = arith.constant 0 : i32
    %c0_i32_1 = arith.constant 0 : i32
    return %c0_i32, %c0_i32_0 : i32, i32
  }
  func.func @transform_2(%arg0: i32) -> (i32, i32) {
    %c0_i32 = arith.constant 0 : i32
    %c0_i32_0 = arith.constant 0 : i32
    %c0_i32_1 = arith.constant 0 : i32
    return %c0_i32, %c0_i32_0 : i32, i32
  }
  func.func @transform_3(%arg0: i32) -> (i32, i32) {
    %c0_i32 = arith.constant 0 : i32
    %c0_i32_0 = arith.constant 0 : i32
    %c0_i32_1 = arith.constant 0 : i32
    return %c0_i32, %c0_i32_0 : i32, i32
  }
  func.func @transform_4(%arg0: i32) -> (i32, i32) {
    %c0_i32 = arith.constant 0 : i32
    %c0_i32_0 = arith.constant 0 : i32
    %c0_i32_1 = arith.constant 0 : i32
    return %c0_i32, %c0_i32_0 : i32, i32
  }
  func.func @transform_5(%arg0: i32) -> (i32, i32) {
    %c0_i32 = arith.constant 0 : i32
    %c0_i32_0 = arith.constant 0 : i32
    %c0_i32_1 = arith.constant 0 : i32
    return %c0_i32, %c0_i32_0 : i32, i32
  }
  func.func @transform_6(%arg0: i32) -> (i32, i32) {
    %c0_i32 = arith.constant 0 : i32
    %c0_i32_0 = arith.constant 0 : i32
    %c0_i32_1 = arith.constant 0 : i32
    return %c0_i32, %c0_i32_0 : i32, i32
  }
  func.func @transform_7(%arg0: i32) -> (i32, i32) {
    %c0_i32 = arith.constant 0 : i32
    %c0_i32_0 = arith.constant 0 : i32
    return %arg0, %c0_i32 : i32, i32
  }
}

</mosaic_0001>

<bundles_post_ra>
// kernel: tpu_custom_call.1
= control target key start
LH: loop header
LB: loop body
LE: loop exit
PB: predicated region body
PF: predicated region fallthrough
CT: control target
= control target key end

     0   :  { %12 = vsyncpa [#allocation3], 0  ;;  %s1017_s0 = inlined_call_operand.hbm [shape: f32[16,128], index: 0, kind: input, shape index: {}]   ;;  %s1018_s1 = inlined_call_operand.hbm [shape: bf16[128,128], index: 1, kind: input, shape index: {}]   ;;  %s1019_s2 = inlined_call_operand.hbm [shape: f32[1,128], index: 2, kind: input, shape index: {}]   ;;  %s1020_s3 = inlined_call_operand.hbm [shape: bf16[128,128], index: 3, kind: input, shape index: {}]   ;;  %s1021_s4 = inlined_call_operand.hbm [shape: f32[1,128], index: 4, kind: input, shape index: {}]   ;;  %s1022_s5 = inlined_call_operand.hbm [shape: bf16[128,128], index: 5, kind: input, shape index: {}]   ;;  %s1023_s6 = inlined_call_operand.hbm [shape: f32[1,128], index: 6, kind: input, shape index: {}]   ;;  %s1024_s7 = inlined_call_operand.hbm [shape: f32[16,128], index: 7, kind: output, shape index: {}]  }
   0x1   :  { %13 = vsyncpa [#allocation6], 0 }
   0x2   :  { %14 = vsyncpa [#allocation9], 0 }
   0x3   :  { %15 = vsyncpa [#allocation12], 0 }
   0x4   :  { %16 = vsyncpa [#allocation4], 0  ;;  %s822_s24 = smov [#allocation5]   ;;  %s636_s28 = scalar_lea.hbm %s1018_s1, 1024 }
   0x5   :  { %s34_s25 = sshll.u32 %s822_s24, 4  ;;  %p637_p0 = scmp.ne.s32.totalorder %s1018_s1, %s636_s28  ;;  %s35_s25 = int_to_ptr.vmem [resolvable:$true] %s34_s25 }
   0x6   :  { %p640_p1 = scmp.lt.u32.totalorder %s636_s28, %s1018_s1 }
   0x8   :  { %p642_p2 = pnand %p640_p1, %p637_p0 }
   0xa   :  { %645 = shalt.err (!%p642_p2)
}
   0xb   :  { %s646_s10 = scalar_lea.vmem %s35_s25, 1024  ;;  %p651_p4 = scmp.lt.s32.totalorder %s35_s25, %s35_s25 }
   0xc   :  { %p647_p3 = scmp.ne.s32.totalorder %s35_s25, %s646_s10  ;;  %p652_p5 = scmp.lt.s32.totalorder %s646_s10, %s646_s10 }
   0xe   :  { %p653_p6 = por %p652_p5, %p651_p4 }
  0x10   :  { %p654_p7 = pnand %p653_p6, %p647_p3 }
  0x12   :  { %657 = shalt.err (!%p654_p7)
}
  0x13   :  { %s823_s11 = smov 64   ;;  %s824_s12 = smov 4  }
  0x14   :  { %40 = dma.hbm_to_vmem [thread:$0]  %s1018_s1, 1024, %s35_s25, [#allocation6], %s823_s11, %s823_s11, %s824_s12  }
  0x15   :  { %s825_s15 = smov [#allocation8]   ;;  %s826_s17 = smov [#allocation11]  }
  0x16   :  { %s56_s16 = sshll.u32 %s825_s15, 4  ;;  %s78_s18 = sshll.u32 %s826_s17, 4  ;;  %s57_s16 = int_to_ptr.vmem [resolvable:$true] %s56_s16  ;;  %s79_s18 = int_to_ptr.vmem [resolvable:$true] %s78_s18 }
  0x17   :  { %s658_s21 = scalar_lea.hbm %s1020_s3, 1024 }
  0x18   :  { %p659_p8 = scmp.ne.s32.totalorder %s1020_s3, %s658_s21  ;;  %p662_p9 = scmp.lt.u32.totalorder %s658_s21, %s1020_s3 }
  0x1a   :  { %p664_p10 = pnand %p662_p9, %p659_p8 }
  0x1c   :  { %667 = shalt.err (!%p664_p10)
}
  0x1d   :  { %s668_s1 = scalar_lea.vmem %s57_s16, 1024  ;;  %p673_p12 = scmp.lt.s32.totalorder %s57_s16, %s57_s16 }
  0x1e   :  { %p669_p11 = scmp.ne.s32.totalorder %s57_s16, %s668_s1  ;;  %p674_p13 = scmp.lt.s32.totalorder %s668_s1, %s668_s1 }
  0x20   :  { %p675_p0 = por %p674_p13, %p673_p12 }
  0x22   :  { %p676_p1 = pnand %p675_p0, %p669_p11 }
  0x24   :  { %679 = shalt.err (!%p676_p1)
}
  0x25   :  { %62 = dma.hbm_to_vmem [thread:$0]  %s1020_s3, 1024, %s57_s16, [#allocation9], %s823_s11, %s823_s11, %s824_s12  }
  0x26   :  { %s680_s30 = scalar_lea.hbm %s1022_s5, 1024 }
  0x27   :  { %p681_p2 = scmp.ne.s32.totalorder %s1022_s5, %s680_s30  ;;  %p684_p3 = scmp.lt.u32.totalorder %s680_s30, %s1022_s5 }
  0x29   :  { %p686_p4 = pnand %p684_p3, %p681_p2 }
  0x2b   :  { %689 = shalt.err (!%p686_p4)
}
  0x2c   :  { %s690_s14 = scalar_lea.vmem %s79_s18, 1024  ;;  %p695_p6 = scmp.lt.s32.totalorder %s79_s18, %s79_s18 }
  0x2d   :  { %p691_p5 = scmp.ne.s32.totalorder %s79_s18, %s690_s14  ;;  %p696_p7 = scmp.lt.s32.totalorder %s690_s14, %s690_s14 }
  0x2f   :  { %p697_p8 = por %p696_p7, %p695_p6 }
  0x31   :  { %p698_p9 = pnand %p697_p8, %p691_p5 }
  0x33   :  { %701 = shalt.err (!%p698_p9)
}
  0x34   :  { %84 = dma.hbm_to_vmem [thread:$0]  %s1022_s5, 1024, %s79_s18, [#allocation12], %s823_s11, %s823_s11, %s824_s12  }
  0x35   :  { %s827_s16 = smov [#allocation2]   ;;  %s702_s21 = scalar_lea.hbm %s1017_s0, 256 }
  0x36   :  { %s22_s17 = sshll.u32 %s827_s16, 4  ;;  %p703_p10 = scmp.ne.s32.totalorder %s1017_s0, %s702_s21  ;;  %s23_s17 = int_to_ptr.vmem [resolvable:$true] %s22_s17 }
  0x37   :  { %p706_p11 = scmp.lt.u32.totalorder %s702_s21, %s1017_s0 }
  0x39   :  { %p708_p12 = pnand %p706_p11, %p703_p10 }
  0x3b   :  { %711 = shalt.err (!%p708_p12)
}
  0x3c   :  { %s712_s1 = scalar_lea.vmem %s23_s17, 256  ;;  %p717_p0 = scmp.lt.s32.totalorder %s23_s17, %s23_s17 }
  0x3d   :  { %p713_p13 = scmp.ne.s32.totalorder %s23_s17, %s712_s1  ;;  %p718_p1 = scmp.lt.s32.totalorder %s712_s1, %s712_s1 }
  0x3f   :  { %p719_p2 = por %p718_p1, %p717_p0 }
  0x41   :  { %p720_p3 = pnand %p719_p2, %p713_p13 }
  0x43   :  { %723 = shalt.err (!%p720_p3)
}
  0x44   :  { %s828_s5 = smov 128   ;;  %s829_s11 = smov 8  }
  0x45   :  { %28 = dma.hbm_to_vmem [thread:$0]  %s1017_s0, 256, %s23_s17, [#allocation3], %s828_s5, %s828_s5, %s829_s11  }
  0x46   :  { %s830_s25 = smov [#allocation7]   ;;  %s831_s28 = smov [#allocation10]  }
  0x47   :  { %s47_s27 = sshll.u32 %s830_s25, 4  ;;  %s69_s29 = sshll.u32 %s831_s28, 4  ;;  %s48_s27 = int_to_ptr.vmem [resolvable:$true] %s47_s27  ;;  %s70_s29 = int_to_ptr.vmem [resolvable:$true] %s69_s29 }
  0x48   :  { %s724_s9 = scalar_lea.hbm %s1019_s2, 16 }
  0x49   :  { %p725_p4 = scmp.ne.s32.totalorder %s1019_s2, %s724_s9  ;;  %p728_p5 = scmp.lt.u32.totalorder %s724_s9, %s1019_s2 }
  0x4b   :  { %p730_p6 = pnand %p728_p5, %p725_p4 }
  0x4d   :  { %733 = shalt.err (!%p730_p6)
}
  0x4e   :  { %s734_s0 = scalar_lea.vmem %s48_s27, 16  ;;  %s738_s15 = scalar_lea.vmem %s48_s27, 32 }
  0x4f   :  { %p735_p7 = scmp.ne.s32.totalorder %s48_s27, %s734_s0  ;;  %p739_p8 = scmp.lt.s32.totalorder %s48_s27, %s48_s27 }
  0x50   :  { %p740_p9 = scmp.lt.s32.totalorder %s738_s15, %s734_s0 }
  0x52   :  { %p741_p10 = por %p740_p9, %p739_p8 }
  0x54   :  { %p742_p11 = pnand %p741_p10, %p735_p7 }
  0x56   :  { %745 = shalt.err (!%p742_p11)
}
  0x57   :  { %50 = dma.hbm_to_vmem [thread:$0]  %s1019_s2, 16, %s48_s27, [#allocation6]  }
  0x58   :  { %s746_s21 = scalar_lea.hbm %s1021_s4, 16 }
  0x59   :  { %p747_p12 = scmp.ne.s32.totalorder %s1021_s4, %s746_s21  ;;  %p750_p13 = scmp.lt.u32.totalorder %s746_s21, %s1021_s4 }
  0x5b   :  { %p752_p0 = pnand %p750_p13, %p747_p12 }
  0x5d   :  { %755 = shalt.err (!%p752_p0)
}
  0x5e   :  { %s756_s1 = scalar_lea.vmem %s70_s29, 16  ;;  %s760_s12 = scalar_lea.vmem %s70_s29, 32 }
  0x5f   :  { %p757_p1 = scmp.ne.s32.totalorder %s70_s29, %s756_s1  ;;  %p761_p2 = scmp.lt.s32.totalorder %s70_s29, %s70_s29 }
  0x60   :  { %p762_p3 = scmp.lt.s32.totalorder %s760_s12, %s756_s1 }
  0x62   :  { %p763_p4 = por %p762_p3, %p761_p2 }
  0x64   :  { %p764_p5 = pnand %p763_p4, %p757_p1 }
  0x66   :  { %767 = shalt.err (!%p764_p5)
}
  0x67   :  { %72 = dma.hbm_to_vmem [thread:$0]  %s1021_s4, 16, %s70_s29, [#allocation9]  }
  0x68   :  { %s832_s25 = smov [#allocation13]   ;;  %s768_s8 = scalar_lea.hbm %s1023_s6, 16 }
  0x69   :  { %s91_s27 = sshll.u32 %s832_s25, 4  ;;  %p769_p6 = scmp.ne.s32.totalorder %s1023_s6, %s768_s8  ;;  %s92_s27 = int_to_ptr.vmem [resolvable:$true] %s91_s27 }
  0x6a   :  { %p772_p7 = scmp.lt.u32.totalorder %s768_s8, %s1023_s6 }
  0x6c   :  { %p774_p8 = pnand %p772_p7, %p769_p6 }
  0x6e   :  { %777 = shalt.err (!%p774_p8)
}
  0x6f   :  { %s778_s3 = scalar_lea.vmem %s92_s27, 16  ;;  %s782_s4 = scalar_lea.vmem %s92_s27, 32 }
  0x70   :  { %p779_p9 = scmp.ne.s32.totalorder %s92_s27, %s778_s3  ;;  %p783_p10 = scmp.lt.s32.totalorder %s92_s27, %s92_s27 }
  0x71   :  { %p784_p11 = scmp.lt.s32.totalorder %s782_s4, %s778_s3 }
  0x73   :  { %p785_p12 = por %p784_p11, %p783_p10 }
  0x75   :  { %p786_p13 = pnand %p785_p12, %p779_p9 }
  0x77   :  { %789 = shalt.err (!%p786_p13)
}
  0x78   :  { %94 = dma.hbm_to_vmem [thread:$0]  %s1023_s6, 16, %s92_s27, [#allocation12]  }
  0x79   :  { %812 = dma.done.wait [#allocation3], 256  }
  0x7a   :  { %813 = vsyncadd [#allocation3], 4294967040 }
  0x7b   :  { %814 = dma.done.wait [#allocation6], 1040  }
  0x7c   :  { %815 = vsyncadd [#allocation6], 4294966256 }
  0x7d   :  { %816 = dma.done.wait [#allocation9], 1040  }
  0x7e   :  { %817 = vsyncadd [#allocation9], 4294966256 }
  0x7f   :  { %818 = dma.done.wait [#allocation12], 1040  }
  0x80   :  { %819 = vsyncadd [#allocation12], 4294966256  ;;  %v833_v0 = vmov 0.0   ;;  %vm834_vm0 = vmmov 0   ;;  %v612_v1 = vld [vmem:[#allocation5] sm:$0xff]   ;;  %v613_v2 = vld [vmem:[#allocation5 + $0x8] sm:$0xff]  }
  0x81   :  { %538 = vmatprep.subr.bf16.mxu0 %v833_v0  ;;  %554 = vmatprep.mubr.msk.bf16.mxu0 %vm834_vm0, %v833_v0  ;;  %v614_v3 = vld [vmem:[#allocation5 + $0x10] sm:$0xff]   ;;  %v620_v4 = vld [vmem:[#allocation8] sm:$0xff]   ;;  %v615_v5 = vld [vmem:[#allocation5 + $0x18] sm:$0xff]   ;;  %s835_s6 = smov [#allocation14]  }
  0x82   :  { %558 = vmatprep.subr.bf16.mxu1 %v833_v0  ;;  %574 = vmatprep.mubr.msk.bf16.mxu1 %vm834_vm0, %v833_v0  ;;  %v621_v6 = vld [vmem:[#allocation8 + $0x8] sm:$0xff]   ;;  %v616_v7 = vld [vmem:[#allocation5 + $0x20] sm:$0xff]   ;;  %v622_v8 = vld [vmem:[#allocation8 + $0x10] sm:$0xff]   ;;  %s469_s15 = sshll.u32 %s835_s6, 4  ;;  %s470_s15 = int_to_ptr.vmem [resolvable:$true] %s469_s15 }
  0x83   :  { %539 = vmatpush3.bf16.msra.mxu0 %v612_v1  ;;  %559 = vmatpush3.bf16.msra.mxu1 %v620_v4  ;;  %v617_v9 = vld [vmem:[#allocation5 + $0x28] sm:$0xff]   ;;  %v623_v10 = vld [vmem:[#allocation8 + $0x18] sm:$0xff]   ;;  %v618_v11 = vld [vmem:[#allocation5 + $0x30] sm:$0xff]   ;;  %s790_s16 = scalar_lea.vmem %s470_s15, 256  ;;  %p795_p1 = scmp.lt.s32.totalorder %s470_s15, %s470_s15 }
  0x84   :  { %540 = vmatprep.subr.bf16.mxu0 %v833_v0  ;;  %560 = vmatprep.subr.bf16.mxu1 %v833_v0  ;;  %v624_v12 = vld [vmem:[#allocation8 + $0x20] sm:$0xff]   ;;  %v619_v13 = vld [vmem:[#allocation5 + $0x38] sm:$0xff]   ;;  %v117_v14 = vld [vmem:[#allocation2] sm:$0xff]  ;;  %p791_p0 = scmp.ne.s32.totalorder %s470_s15, %s790_s16  ;;  %p796_p2 = scmp.lt.s32.totalorder %s790_s16, %s790_s16 }
  0x85   :  { %v118_v15 = vld [vmem:[#allocation2 + $0x8] sm:$0xff]  ;;  %v625_v16 = vld [vmem:[#allocation8 + $0x28] sm:$0xff]   ;;  %v484_v26 = vld [vmem:[#allocation7] ss:$0 sm:$0xff] }
  0x86   :  { %v119_v17 = vpack.c.bf16 %v118_v15, %v117_v14  ;;  %v626_v18 = vld [vmem:[#allocation8 + $0x30] sm:$0xff]   ;;  %v627_v19 = vld [vmem:[#allocation8 + $0x38] sm:$0xff]   ;;  %v628_v20 = vld [vmem:[#allocation11] sm:$0xff]   ;;  %p797_p3 = por %p796_p2, %p795_p1 }
  0x87   :  { %541 = vmatpush3.bf16.msra.mxu0 %v613_v2  ;;  %561 = vmatpush3.bf16.msra.mxu1 %v621_v6  ;;  %v629_v21 = vld [vmem:[#allocation11 + $0x8] sm:$0xff]   ;;  %v630_v22 = vld [vmem:[#allocation11 + $0x10] sm:$0xff]   ;;  %v631_v23 = vld [vmem:[#allocation11 + $0x18] sm:$0xff]  }
  0x88   :  { %542 = vmatprep.subr.bf16.mxu0 %v833_v0  ;;  %562 = vmatprep.subr.bf16.mxu1 %v833_v0  ;;  %v632_v24 = vld [vmem:[#allocation11 + $0x20] sm:$0xff]   ;;  %v633_v25 = vld [vmem:[#allocation11 + $0x28] sm:$0xff]   ;;  %v634_v36 = vld [vmem:[#allocation11 + $0x30] sm:$0xff]   ;;  %p798_p4 = pnand %p797_p3, %p791_p0 }
  0x89   :  { %v635_v37 = vld [vmem:[#allocation11 + $0x38] sm:$0xff]   ;;  %v502_v48 = vld [vmem:[#allocation13] ss:$0 sm:$0xff] }
  0x8a   :  { %v493_v38 = vld [vmem:[#allocation10] ss:$0 sm:$0xff] }
  0x8b   :  { %543 = vmatpush3.bf16.msra.mxu0 %v614_v3  ;;  %563 = vmatpush3.bf16.msra.mxu1 %v622_v8 }
  0x8c   :  { %544 = vmatprep.subr.bf16.mxu0 %v833_v0  ;;  %564 = vmatprep.subr.bf16.mxu1 %v833_v0 }
  0x8f   :  { %545 = vmatpush3.bf16.msra.mxu0 %v615_v5  ;;  %565 = vmatpush3.bf16.msra.mxu1 %v623_v10 }
  0x90   :  { %546 = vmatprep.subr.bf16.mxu0 %v833_v0  ;;  %566 = vmatprep.subr.bf16.mxu1 %v833_v0 }
  0x93   :  { %547 = vmatpush3.bf16.msra.mxu0 %v616_v7  ;;  %567 = vmatpush3.bf16.msra.mxu1 %v624_v12 }
  0x94   :  { %548 = vmatprep.subr.bf16.mxu0 %v833_v0  ;;  %568 = vmatprep.subr.bf16.mxu1 %v833_v0 }
  0x97   :  { %549 = vmatpush3.bf16.msra.mxu0 %v617_v9  ;;  %569 = vmatpush3.bf16.msra.mxu1 %v625_v16 }
  0x98   :  { %550 = vmatprep.subr.bf16.mxu0 %v833_v0  ;;  %570 = vmatprep.subr.bf16.mxu1 %v833_v0 }
  0x9b   :  { %551 = vmatpush3.bf16.msra.mxu0 %v618_v11  ;;  %571 = vmatpush3.bf16.msra.mxu1 %v626_v18 }
  0x9c   :  { %552 = vmatprep.subr.bf16.mxu0 %v833_v0  ;;  %572 = vmatprep.subr.bf16.mxu1 %v833_v0 }
  0x9f   :  { %553 = vmatpush3.bf16.msra.mxu0 %v619_v13  ;;  %573 = vmatpush3.bf16.msra.mxu1 %v627_v19 }
  0xa0   :  { %578 = vmatprep.subr.bf16.mxu0 %v833_v0 }
  0xa2   :  { %555 = vmatmul.mubr.bf16.vlgmr.msra.gmra.mrb[0].mxu0 %v119_v17 }
  0xa3   :  { %594 = vmatprep.mubr.msk.bf16.mxu0 %vm834_vm0, %v833_v0  ;;  %579 = vmatpush3.bf16.msra.mxu0 %v628_v20 }
  0xa4   :  { %580 = vmatprep.subr.bf16.mxu0 %v833_v0 }
  0xa7   :  { %581 = vmatpush3.bf16.msra.mxu0 %v629_v21 }
  0xa8   :  { %582 = vmatprep.subr.bf16.mxu0 %v833_v0 }
  0xab   :  { %583 = vmatpush3.bf16.msra.mxu0 %v630_v22 }
  0xac   :  { %584 = vmatprep.subr.bf16.mxu0 %v833_v0 }
  0xaf   :  { %585 = vmatpush3.bf16.msra.mxu0 %v631_v23 }
  0xb0   :  { %586 = vmatprep.subr.bf16.mxu0 %v833_v0 }
  0xb3   :  { %587 = vmatpush3.bf16.msra.mxu0 %v632_v24 }
  0xb4   :  { %588 = vmatprep.subr.bf16.mxu0 %v833_v0 }
  0xb7   :  { %589 = vmatpush3.bf16.msra.mxu0 %v633_v25 }
  0xb8   :  { %590 = vmatprep.subr.bf16.mxu0 %v833_v0 }
  0xbb   :  { %591 = vmatpush3.bf16.msra.mxu0 %v634_v36 }
  0xbc   :  { %592 = vmatprep.subr.bf16.mxu0 %v833_v0 }
  0xbf   :  { %593 = vmatpush3.bf16.msra.mxu0 %v635_v37 }
 0x175   :  { %v225_v27 = vpop.f32.mrb[0].mxu0 }
 0x176   :  { %v226_v28 = vadd.f32 %v484_v26, %v225_v27  ;;  %v556_v29 = vpop.f32.mrb[1].mxu0 }
 0x177   :  { %v228_v30 = vpop.f32.mrb[2].mxu0 }
 0x178   :  { %v229_v31 = vadd.f32 %v484_v26, %v228_v30  ;;  %v557_v32 = vpop.f32.mrb[3].mxu0  ;;  %v232_v33 = vmax.f32 %v226_v28, 0.0 }
 0x17a   :  { %v233_v34 = vmax.f32 %v229_v31, 0.0 }
 0x17c   :  { %v234_v35 = vpack.c.bf16 %v233_v34, %v232_v33 }
 0x17e   :  { %575 = vmatmul.mubr.bf16.vlgmr.msra.gmra.mrb[0].mxu1 %v234_v35 }
 0x251   :  { %v340_v39 = vpop.f32.mrb[0].mxu1 }
 0x252   :  { %v341_v40 = vadd.f32 %v493_v38, %v340_v39  ;;  %v576_v41 = vpop.f32.mrb[1].mxu1 }
 0x253   :  { %v343_v42 = vpop.f32.mrb[2].mxu1 }
 0x254   :  { %v344_v43 = vadd.f32 %v493_v38, %v343_v42  ;;  %v577_v44 = vpop.f32.mrb[3].mxu1  ;;  %v347_v45 = vmax.f32 %v341_v40, 0.0 }
 0x256   :  { %v348_v46 = vmax.f32 %v344_v43, 0.0 }
 0x258   :  { %v349_v47 = vpack.c.bf16 %v348_v46, %v347_v45 }
 0x25a   :  { %595 = vmatmul.mubr.bf16.vlgmr.msra.gmra.mrb[4].mxu0 %v349_v47 }
 0x32d   :  { %v455_v49 = vpop.f32.mrb[4].mxu0 }
 0x32e   :  { %v456_v50 = vadd.f32 %v502_v48, %v455_v49  ;;  %v596_v51 = vpop.f32.mrb[5].mxu0 }
 0x32f   :  { %v458_v52 = vpop.f32.mrb[6].mxu0 }
 0x330   :  { %462 = vst [vmem:[#allocation14] sm:$0xff] %v456_v50  ;;  %v459_v53 = vadd.f32 %v502_v48, %v458_v52  ;;  %v597_v54 = vpop.f32.mrb[7].mxu0 }
 0x332   :  { %463 = vst [vmem:[#allocation14 + $0x8] sm:$0xff] %v459_v53 }
 0x333   :  { %801 = shalt.err (!%p798_p4)
}
 0x334   :  { %s802_s20 = scalar_lea.hbm %s1024_s7, 256 }
 0x335   :  { %p803_p5 = scmp.ne.s32.totalorder %s1024_s7, %s802_s20  ;;  %p806_p6 = scmp.lt.u32.totalorder %s802_s20, %s1024_s7 }
 0x337   :  { %p808_p7 = pnand %p806_p6, %p803_p5 }
 0x339   :  { %811 = shalt.err (!%p808_p7)
}
 0x33a   :  { %475 = dma.vmem_to_hbm [thread:$0]  %s470_s15, 256, %s1024_s7, [#allocation4], %s828_s5, %s828_s5, %s829_s11  }
 0x33b   :  { %820 = dma.done.wait [#allocation4], 256  }
 0x33c   :  { %821 = vsyncadd [#allocation4], 4294967040 }
 0x33d   :  { %479 = vsyncpa [#allocation3], 1 }
 0x33e   :  { %480 = vsyncpa [#allocation6], 1 }
 0x33f   :  { %481 = vsyncpa [#allocation9], 1 }
 0x340   :  { %482 = vsyncpa [#allocation12], 1 }
 0x341   :  { %483 = vsyncpa [#allocation4], 1 }

</bundles_post_ra>
